<compile_context>
chip_gen: v6e
topology: v6e:2x2x1
jax: 0.10.0
libtpu: 0.0.40
codegen_flags: <defaults>
</compile_context>

<pallas_src>
import functools

import jax
import jax.numpy as jnp
from jax import lax
from jax.experimental import pallas as pl
from jax.experimental.pallas import tpu as pltpu


_LOSS_LANES = 128  # packed loss output: lane 0 = selection, 1 = transition, 2 = generator


def _generator_loss_kernel(mask_ref, length_ref, losses_ref, valid_ref,
                           *, theta, gamma):
    mask = mask_ref[...]                 # [TB, T] f32
    length_i = length_ref[...]           # [TB, 1] i32
    tb, t = mask.shape

    # sequence_mask(lengths=length, max_len=T) with exact integer comparison.
    col = lax.broadcasted_iota(jnp.int32, (tb, t), 1)
    mask_for_valid = (col < length_i).astype(jnp.float32)          # [TB, T]

    # valid_mask = mask * mask_for_valid   (half of all HBM traffic; required output)
    valid_mask = mask * mask_for_valid
    valid_ref[...] = valid_mask

    # One exact reciprocal, reused for both losses.
    inv_len = 1.0 / length_i.astype(jnp.float32)                   # [TB, 1]

    # selection_loss = sum(valid_mask, dim=1) / length
    sel = jnp.sum(valid_mask, axis=1, keepdims=True) * inv_len     # [TB, 1]

    # mask_shift_right = cat([zeros(TB,1), mask[:, :-1]], dim=1)
    # (cyclic XLU roll, then re-zero column 0; only valid because T is un-tiled)
    rolled = pltpu.roll(mask, shift=1, axis=1)
    mask_shift_right = jnp.where(col == 0, 0.0, rolled)

    # transitions_loss = sum(|mask - mask_shift_right| * mask_for_valid, dim=1) / length
    transitions = jnp.abs(mask - mask_shift_right) * mask_for_valid
    trans = jnp.sum(transitions, axis=1, keepdims=True) * inv_len  # [TB, 1]

    gen = theta * sel + gamma * trans                              # [TB, 1]

    # Pack the three (TB, 1) losses into one lane-dense (TB, 128) store.
    lane = lax.broadcasted_iota(jnp.int32, (tb, _LOSS_LANES), 1)
    losses = (jnp.where(lane == 0, sel, 0.0)
              + jnp.where(lane == 1, trans, 0.0)
              + jnp.where(lane == 2, gen, 0.0))
    losses_ref[...] = losses


def _vmem_capacity_bytes():
    try:
        return int(pltpu.get_tpu_info().vmem_capacity_bytes)
    except Exception:
        return 64 << 20   # conservative (v7x-sized) fallback


def _select_tile_b(B, T, vmem_capacity):
    # Double-buffered per-row footprint: mask in + valid_mask out
    # (+ length row + packed 128-lane loss row).
    bytes_per_row = 2 * (2 * T * 4 + 4 + _LOSS_LANES * 4)
    budget = min(vmem_capacity // 2, 64 << 20)   # headroom for scratch / regalloc
    tile = budget // max(bytes_per_row, 1)
    tile = max(8, (tile // 8) * 8)               # f32 sublane multiple
    tile = min(tile, 1024)                       # per-step overhead amortized well before this
    if B <= tile:
        return B                                 # single full-dim block is always legal
    return tile


def generator_loss(mask, length, *, theta, gamma, tile_b=None):
    """mask: [B, T] float; length: [B] int-like true lengths.

    Returns (selection_loss [B], transitions_loss [B], generator_loss [B],
             valid_mask [B, T]) — same semantics as the PyTorch module.
    """
    mask = jnp.asarray(mask, jnp.float32)
    B, T = mask.shape
    length_i = jnp.asarray(length).reshape(B, 1).astype(jnp.int32)

    cap = _vmem_capacity_bytes()
    if tile_b is None:
        tile_b = _select_tile_b(B, T, cap)
    tile_b = min(int(tile_b), B)
    grid = (pl.cdiv(B, tile_b),)

    vmem_limit = int(min(cap * 3 // 4, 96 << 20))

    kernel = functools.partial(_generator_loss_kernel,
                               theta=float(theta), gamma=float(gamma))

    losses, valid_mask = pl.pallas_call(
        kernel,
        out_shape=(
            jax.ShapeDtypeStruct((B, _LOSS_LANES), jnp.float32),   # packed losses
            jax.ShapeDtypeStruct((B, T), jnp.float32),             # valid_mask
        ),
        grid=grid,
        in_specs=[
            pl.BlockSpec((tile_b, T), lambda i: (i, 0)),
            pl.BlockSpec((tile_b, 1), lambda i: (i, 0)),
        ],
        out_specs=(
            pl.BlockSpec((tile_b, _LOSS_LANES), lambda i: (i, 0)),
            pl.BlockSpec((tile_b, T), lambda i: (i, 0)),
        ),
        compiler_params=pltpu.CompilerParams(
            dimension_semantics=("parallel",),     # v7x: shard batch across both TCs
            vmem_limit_bytes=vmem_limit,
        ),
    )(mask, length_i)

    return losses[:, 0], losses[:, 1], losses[:, 2], valid_mask


def _reference(mask, length, theta, gamma):
    """Pure-JAX reference mirroring the PyTorch forward."""
    B, T = mask.shape
    length_f = length.astype(jnp.float32)
    col = jnp.arange(T)[None, :]
    mask_for_valid = (col < length[:, None]).astype(jnp.float32)
    valid_mask = mask * mask_for_valid
    selection_loss = jnp.sum(valid_mask, axis=1) / length_f
    padding = jnp.zeros((B, 1), jnp.float32)
    mask_shift_right = jnp.concatenate([padding, mask[:, :-1]], axis=1)
    transitions = jnp.abs(mask - mask_shift_right) * mask_for_valid
    transitions_loss = jnp.sum(transitions, axis=1) / length_f
    gen = theta * selection_loss + gamma * transitions_loss
    return selection_loss, transitions_loss, gen, valid_mask


if __name__ == "__main__":
    theta, gamma = 0.1, 0.05   # args.theta, args.gamma (deterministic in-script)

    key = jax.random.PRNGKey(0)
    k1, k2, k3, k4 = jax.random.split(key, 4)

    # Case 1: small shapes (single block, block == full array dims).
    B1, T1 = 2, 8
    mask1 = jax.random.uniform(k1, (B1, T1), dtype=jnp.float32)
    len1 = jax.random.randint(k2, (B1,), minval=1, maxval=T1 + 1, dtype=jnp.int32)

    out1 = generator_loss(mask1, len1, theta=theta, gamma=gamma)
    jax.block_until_ready(out1)
    ref1 = _reference(mask1, len1, theta, gamma)
    for a, b in zip(out1, ref1):
        assert jnp.allclose(a, b, atol=1e-6), "mismatch (case 1)"

    # Case 2: exercises the batch-tiled, pipelined path with a partial last
    # block (B=20, tile_b=8 -> 3 grid steps) and a non-multiple-of-128 T.
    B2, T2 = 20, 136
    mask2 = jax.random.uniform(k3, (B2, T2), dtype=jnp.float32)
    len2 = jax.random.randint(k4, (B2,), minval=1, maxval=T2 + 1, dtype=jnp.int32)

    out2 = generator_loss(mask2, len2, theta=theta, gamma=gamma, tile_b=8)
    jax.block_until_ready(out2)
    ref2 = _reference(mask2, len2, theta, gamma)
    for a, b in zip(out2, ref2):
        assert jnp.allclose(a, b, atol=1e-6), "mismatch (case 2)"

    print("KERNEL_OK")
</pallas_src>

<mosaic_0001>
module attributes {stable_mosaic.version = 11 : i64} {
  func.func @_generator_loss_kernel(%arg0: i32, %arg1: memref<2x8xf32, #tpu.memory_space<vmem>>, %arg2: memref<2x1xi32, #tpu.memory_space<vmem>>, %arg3: memref<2x128xf32, #tpu.memory_space<vmem>>, %arg4: memref<2x8xf32, #tpu.memory_space<vmem>>) attributes {dimension_semantics = [#tpu.dimension_semantics<parallel>], iteration_bounds = array<i64: 1>, scalar_prefetch = 0 : i64, scratch_operands = 0 : i64, tpu.core_type = #tpu.core_type<tc>, window_params = [{transform_indices = @transform_0, window_bounds = array<i64: 2, 8>}, {transform_indices = @transform_1, window_bounds = array<i64: 2, 1>}, {transform_indices = @transform_2, window_bounds = array<i64: 2, 128>}, {transform_indices = @transform_3, window_bounds = array<i64: 2, 8>}]} {
    %c0 = arith.constant 0 : index
    %c0_0 = arith.constant 0 : index
    %0 = vector.load %arg1[%c0, %c0_0] : memref<2x8xf32, #tpu.memory_space<vmem>>, vector<2x8xf32>
    %c0_1 = arith.constant 0 : index
    %c0_2 = arith.constant 0 : index
    %1 = vector.load %arg2[%c0_1, %c0_2] : memref<2x1xi32, #tpu.memory_space<vmem>>, vector<2x1xi32>
    %2 = tpu.iota {dimensions = array<i32: 1>} : vector<2x8xi32>
    %3 = vector.broadcast %1 : vector<2x1xi32> to vector<2x8xi32>
    %4 = arith.cmpi slt, %2, %3 : vector<2x8xi32>
    %5 = arith.extui %4 : vector<2x8xi1> to vector<2x8xi32>
    %6 = arith.sitofp %5 : vector<2x8xi32> to vector<2x8xf32>
    %7 = arith.mulf %0, %6 : vector<2x8xf32>
    %c0_3 = arith.constant 0 : index
    %c0_4 = arith.constant 0 : index
    %8 = vector.load %arg4[%c0_3, %c0_4] : memref<2x8xf32, #tpu.memory_space<vmem>>, vector<2x8xf32>
    tpu.vector_store %arg4[%c0_3, %c0_4], %7 {strides = array<i32>} : memref<2x8xf32, #tpu.memory_space<vmem>>, vector<2x8xf32>,
    %9 = arith.sitofp %1 : vector<2x1xi32> to vector<2x1xf32>
    %cst = arith.constant 1.000000e+00 : f32
    %10 = vector.broadcast %cst : f32 to vector<2x1xf32>
    %11 = arith.divf %10, %9 : vector<2x1xf32>
    %cst_5 = arith.constant dense<0.000000e+00> : vector<2xf32>
    %12 = vector.multi_reduction <add>, %7, %cst_5 [1] : vector<2x8xf32> to vector<2xf32>
    %13 = vector.shape_cast %12 : vector<2xf32> to vector<2x1xf32>
    %14 = arith.mulf %13, %11 : vector<2x1xf32>
    %c1_i32 = arith.constant 1 : i32
    %15 = tpu.dynamic_rotate %0 by %c1_i32 dim 1 : vector<2x8xf32>, i32 -> vector<2x8xf32>
    %c0_i32 = arith.constant 0 : i32
    %16 = vector.broadcast %c0_i32 : i32 to vector<2x8xi32>
    %17 = arith.cmpi eq, %2, %16 : vector<2x8xi32>
    %cst_6 = arith.constant 0.000000e+00 : f32
    %18 = vector.broadcast %cst_6 : f32 to vector<2x8xf32>
    %19 = arith.select %17, %18, %15 : vector<2x8xi1>, vector<2x8xf32>
    %20 = arith.subf %0, %19 : vector<2x8xf32>
    %21 = math.absf %20 : vector<2x8xf32>
    %22 = arith.mulf %21, %6 : vector<2x8xf32>
    %cst_7 = arith.constant dense<0.000000e+00> : vector<2xf32>
    %23 = vector.multi_reduction <add>, %22, %cst_7 [1] : vector<2x8xf32> to vector<2xf32>
    %24 = vector.shape_cast %23 : vector<2xf32> to vector<2x1xf32>
    %25 = arith.mulf %24, %11 : vector<2x1xf32>
    %cst_8 = arith.constant 1.000000e-01 : f32
    %26 = vector.broadcast %cst_8 : f32 to vector<2x1xf32>
    %27 = arith.mulf %26, %14 : vector<2x1xf32>
    %cst_9 = arith.constant 5.000000e-02 : f32
    %28 = vector.broadcast %cst_9 : f32 to vector<2x1xf32>
    %29 = arith.mulf %28, %25 : vector<2x1xf32>
    %30 = arith.addf %27, %29 : vector<2x1xf32>
    %31 = tpu.iota {dimensions = array<i32: 1>} : vector<2x128xi32>
    %c0_i32_10 = arith.constant 0 : i32
    %32 = vector.broadcast %c0_i32_10 : i32 to vector<2x128xi32>
    %33 = arith.cmpi eq, %31, %32 : vector<2x128xi32>
    %cst_11 = arith.constant 0.000000e+00 : f32
    %34 = vector.shape_cast %14 : vector<2x1xf32> to vector<2x1xf32>
    %35 = vector.broadcast %34 : vector<2x1xf32> to vector<2x128xf32>
    %36 = vector.broadcast %cst_11 : f32 to vector<2x128xf32>
    %37 = arith.select %33, %35, %36 : vector<2x128xi1>, vector<2x128xf32>
    %c1_i32_12 = arith.constant 1 : i32
    %38 = vector.broadcast %c1_i32_12 : i32 to vector<2x128xi32>
    %39 = arith.cmpi eq, %31, %38 : vector<2x128xi32>
    %cst_13 = arith.constant 0.000000e+00 : f32
    %40 = vector.shape_cast %25 : vector<2x1xf32> to vector<2x1xf32>
    %41 = vector.broadcast %40 : vector<2x1xf32> to vector<2x128xf32>
    %42 = vector.broadcast %cst_13 : f32 to vector<2x128xf32>
    %43 = arith.select %39, %41, %42 : vector<2x128xi1>, vector<2x128xf32>
    %44 = arith.addf %37, %43 : vector<2x128xf32>
    %c2_i32 = arith.constant 2 : i32
    %45 = vector.broadcast %c2_i32 : i32 to vector<2x128xi32>
    %46 = arith.cmpi eq, %31, %45 : vector<2x128xi32>
    %cst_14 = arith.constant 0.000000e+00 : f32
    %47 = vector.shape_cast %30 : vector<2x1xf32> to vector<2x1xf32>
    %48 = vector.broadcast %47 : vector<2x1xf32> to vector<2x128xf32>
    %49 = vector.broadcast %cst_14 : f32 to vector<2x128xf32>
    %50 = arith.select %46, %48, %49 : vector<2x128xi1>, vector<2x128xf32>
    %51 = arith.addf %44, %50 : vector<2x128xf32>
    %c0_15 = arith.constant 0 : index
    %c0_16 = arith.constant 0 : index
    %52 = vector.load %arg3[%c0_15, %c0_16] : memref<2x128xf32, #tpu.memory_space<vmem>>, vector<2x128xf32>
    tpu.vector_store %arg3[%c0_15, %c0_16], %51 {strides = array<i32>} : memref<2x128xf32, #tpu.memory_space<vmem>>, vector<2x128xf32>,
    return
  }
  func.func @transform_0(%arg0: i32) -> (i32, i32) {
    %c0_i32 = arith.constant 0 : i32
    %c0_i32_0 = arith.constant 0 : i32
    return %arg0, %c0_i32 : i32, i32
  }
  func.func @transform_1(%arg0: i32) -> (i32, i32) {
    %c0_i32 = arith.constant 0 : i32
    %c0_i32_0 = arith.constant 0 : i32
    return %arg0, %c0_i32 : i32, i32
  }
  func.func @transform_2(%arg0: i32) -> (i32, i32) {
    %c0_i32 = arith.constant 0 : i32
    %c0_i32_0 = arith.constant 0 : i32
    return %arg0, %c0_i32 : i32, i32
  }
  func.func @transform_3(%arg0: i32) -> (i32, i32) {
    %c0_i32 = arith.constant 0 : i32
    %c0_i32_0 = arith.constant 0 : i32
    return %arg0, %c0_i32 : i32, i32
  }
}

</mosaic_0001>

<bundles_post_ra>
// kernel: tpu_custom_call.1
= control target key start
LH: loop header
LB: loop body
LE: loop exit
PB: predicated region body
PF: predicated region fallthrough
CT: control target
= control target key end

     0   :  { %9 = vsyncpa [#allocation3], 0  ;;  %s164_s14 = smov 8   ;;  %v165_v1 = vmov 0   ;;  %s209_s0 = inlined_call_operand.vmem [shape: f32[2,8], index: 0, kind: input, shape index: {}]   ;;  %s210_s1 = inlined_call_operand.vmem [shape: s32[2,1], index: 1, kind: input, shape index: {}]   ;;  %s211_s2 = inlined_call_operand.hbm [shape: f32[2,128], index: 2, kind: output, shape index: {0}]   ;;  %s212_s3 = inlined_call_operand.hbm [shape: f32[2,8], index: 3, kind: output, shape index: {1}]  }
   0x1   :  { %v15_v0 = vld [vmem:[%s209_s0] sm:$0x3]  ;;  %116 = vset.pattern.permute.xlu1 %v165_v1 }
   0x2   :  { %36 = vrot.lane.b32.xlu0 %v15_v0, %s164_s14  ;;  %v16_v2 = vld [vmem:[%s210_s1] sm:$0x3] }
   0x3   :  { %10 = vsyncpa [#allocation5], 0  ;;  %20 = vperm.xlu1 %116, %v16_v2   ;;  %117 = vset.pattern.permute.xlu0 %v165_v1  ;;  %vm35_vm0 = vcmask 1047616   ;;  %v17_v5 = vlaneseq  ;;  %v166_v8 = vmov 0.0   ;;  %vm26_vm2 = vcmask 58368   ;;  %s167_s0 = smov 121  }
   0x4   :  { %v28_v14 = vcvt.s32.f32 %v16_v2  ;;  %s168_s1 = smov [#allocation4]  }
   0x5   :  { %v18_v6 = vand.u32 127, %v17_v5  ;;  %s97_s17 = sshll.u32 %s168_s1, 4  ;;  %s98_s17 = int_to_ptr.vmem [resolvable:$true] %s97_s17 }
   0x6   :  { %118 = vrcp.f32 %v28_v14  ;;  %s120_s18 = scalar_lea.vmem %s98_s17, 32  ;;  %p125_p1 = scmp.lt.s32.totalorder %s98_s17, %s98_s17 }
   0x7   :  { %vm42_vm3 = vcmp.eq.s32.totalorder %v18_v6, 0  ;;  %p121_p0 = scmp.ne.s32.totalorder %s98_s17, %s120_s18  ;;  %p126_p2 = scmp.lt.s32.totalorder %s120_s18, %s120_s18 }
   0x9   :  { %p127_p3 = por %p126_p2, %p125_p1 }
   0xb   :  { %p128_p4 = pnand %p127_p3, %p121_p0 }
  0x13   :  { %v119_v21 = vpop.eup %118 }
  0x74   :  { %v37_v3 = vpop.permute.xlu0 %36 }
  0x75   :  { %v38_v4 = vsel %vm35_vm0, %v37_v3, %v15_v0 }
  0x76   :  { %39 = vrot.lane.b32.xlu0 %v38_v4, %s164_s14 }
  0x7e   :  { %v21_v7 = vpop.permute.xlu1 %20 }
  0x7f   :  { %vm22_vm1 = vcmp.lt.s32.totalorder %v18_v6, %v21_v7 }
  0x80   :  { %v109_v9 = vsel %vm22_vm1, 1.0, %v166_v8 }
  0x81   :  { %v25_v10 = vmul.f32 %v109_v9, %v15_v0 }
  0x83   :  { %v31_v11 = vsel %vm26_vm2, %v25_v10, 0.0  ;;  %27 = vst.msk [vmem:[#allocation4] sm:$0x3] %vm26_vm2, %v25_v10 }
  0x95   :  { %32 = vadd.xlane.f32.xlu0 %v31_v11 }
  0xe8   :  { %v40_v12 = vpop.permute.xlu0 %39 }
  0xe9   :  { %v41_v13 = vsel %vm35_vm0, %v40_v12, %v15_v0 }
  0xea   :  { %44 = vrot.lane.b32.xlu1 %v41_v13, %s167_s0 }
 0x11e   :  { %v33_v22 = vpop.xlane.xlu0 %32 }
 0x11f   :  { %v34_v23 = vmul.f32 %v119_v21, %v33_v22 }
 0x121   :  { %60 = vperm.xlu0 %117, %v34_v23   ;;  %v55_v26 = vmul.f32 0.1, %v34_v23 }
 0x15c   :  { %v45_v15 = vpop.permute.xlu1 %44 }
 0x15d   :  { %v47_v16 = vsel %vm42_vm3, 0.0, %v45_v15 }
 0x15e   :  { %v48_v17 = vsub.f32 %v15_v0, %v47_v16 }
 0x160   :  { %v49_v18 = vand.u32 2147483647, %v48_v17 }
 0x162   :  { %v50_v19 = vmul.f32 %v109_v9, %v49_v18 }
 0x164   :  { %v51_v20 = vsel %vm26_vm2, %v50_v19, 0.0 }
 0x165   :  { %52 = vadd.xlane.f32.xlu1 %v51_v20 }
 0x1ee   :  { %v53_v24 = vpop.xlane.xlu1 %52 }
 0x1ef   :  { %v54_v25 = vmul.f32 %v119_v21, %v53_v24 }
 0x1f1   :  { %v56_v27 = vmul.f32 0.05, %v54_v25  ;;  %67 = vperm.xlu1 %116, %v54_v25  }
 0x1f3   :  { %v57_v28 = vadd.f32 %v56_v27, %v55_v26 }
 0x1f5   :  { %75 = vperm.xlu1 %116, %v57_v28  }
 0x1f6   :  { %131 = shalt.err (!%p128_p4)
}
 0x1f7   :  { %100 = dma.vmem_to_hbm [thread:$0]  %s98_s17, 32, %s212_s3, [#allocation5]   ;;  %vm64_vm4 = vcmp.eq.s32.totalorder %v18_v6, 1  ;;  %v61_v29 = vpop.permute.xlu0 %60  ;;  %vm72_vm5 = vcmp.eq.s32.totalorder %v18_v6, 2 }
 0x1f8   :  { %v63_v32 = vsel %vm42_vm3, %v61_v29, 0.0  ;;  %s169_s21 = smov [#allocation2]  }
 0x1f9   :  { %s87_s22 = sshll.u32 %s169_s21, 4  ;;  %s88_s22 = int_to_ptr.vmem [resolvable:$true] %s87_s22 }
 0x1fa   :  { %s140_s23 = scalar_lea.vmem %s88_s22, 32  ;;  %p145_p6 = scmp.lt.s32.totalorder %s88_s22, %s88_s22 }
 0x1fb   :  { %p141_p5 = scmp.ne.s32.totalorder %s88_s22, %s140_s23  ;;  %p146_p7 = scmp.lt.s32.totalorder %s140_s23, %s140_s23 }
 0x1fd   :  { %p147_p8 = por %p146_p7, %p145_p6 }
 0x1ff   :  { %p148_p9 = pnand %p147_p8, %p141_p5 }
 0x26c   :  { %v68_v30 = vpop.permute.xlu1 %67 }
 0x26d   :  { %v70_v31 = vsel %vm64_vm4, %v68_v30, 0.0 }
 0x26e   :  { %v71_v33 = vadd.f32 %v70_v31, %v63_v32 }
 0x270   :  { %v76_v34 = vpop.permute.xlu1 %75 }
 0x271   :  { %v78_v35 = vsel %vm72_vm5, %v76_v34, 0.0 }
 0x272   :  { %v79_v36 = vadd.f32 %v78_v35, %v71_v33 }
 0x274   :  { %80 = vst [vmem:[#allocation2] sm:$0x3] %v79_v36 }
 0x275   :  { %151 = shalt.err (!%p148_p9)
}
 0x276   :  { %90 = dma.vmem_to_hbm [thread:$0]  %s88_s22, 32, %s211_s2, [#allocation3]  }
 0x277   :  { %160 = dma.done.wait [#allocation3], 32  }
 0x278   :  { %161 = vsyncadd [#allocation3], 4294967264 }
 0x279   :  { %162 = dma.done.wait [#allocation5], 32  }
 0x27a   :  { %163 = vsyncadd [#allocation5], 4294967264 }
 0x27b   :  { %107 = vsyncpa [#allocation3], 1 }
 0x27c   :  { %108 = vsyncpa [#allocation5], 1 }

</bundles_post_ra>
